<compile_context>
chip_gen: v7x
topology: tpu7x:2x2x1
jax: 0.10.0
libtpu: 0.0.40
codegen_flags: <defaults>
</compile_context>

<pallas_src>
import jax
import jax.numpy as jnp
from jax.experimental import pallas as pl
from jax.experimental.pallas import tpu as pltpu

EPS = 1e-5


def _tap_masks(H, W):
    """(9, H*W) float32 validity masks for the 3x3 taps (kh-major order)."""
    p = jnp.arange(H * W)
    hh, ww = p // W, p % W
    rows = []
    for oy in (-1, 0, 1):
        for ox in (-1, 0, 1):
            rows.append((hh + oy >= 0) & (hh + oy < H)
                        & (ww + ox >= 0) & (ww + ox < W))
    return jnp.stack(rows).astype(jnp.float32)


def _make_kernel(H, W, C):
    HW = H * W
    # lane-roll amounts for the 9 taps, same (kh, kw) order as the weight reshape
    shifts = [(-(oy * W + ox)) % HW for oy in (-1, 0, 1) for ox in (-1, 0, 1)]
    inv_hw = 1.0 / HW
    inv_c = 1.0 / C

    def kernel(x_ref, mask_ref, w1_ref, w2_ref,
               g1_ref, b1_ref, rm1_ref, rv1_ref,
               g2_ref, b2_ref, rm2_ref, rv2_ref,
               mw1_ref, vw1_ref, mw2_ref, vw2_ref, out_ref):
        x = x_ref[0]                                         # (C, HW) f32, lane-dense
        masks = [mask_ref[k:k + 1, :] for k in range(9)]     # hoisted, reused by both convs

        def conv3x3(v, w_ref):
            # one fused im2col matmul: (C, 9C) @ (9C, HW), bf16 inputs / f32 accumulate
            taps = []
            for k, amt in enumerate(shifts):
                if amt == 0:
                    taps.append(v)                           # center tap, no border
                else:
                    t = pltpu.roll(v, amt, 1)                # XLU lane rotate
                    taps.append(t * masks[k])                # zero the wrapped border
            patch = jnp.concatenate(taps, axis=0).astype(jnp.bfloat16)   # (9C, HW)
            return jnp.dot(w_ref[...], patch,
                           preferred_element_type=jnp.float32)           # (C, HW) f32

        def ssn(y, g_ref, b_ref, rm_ref, rv_ref, mw_ref, vw_ref):
            # Switchable-Norm, eval semantics (BN term uses moving averages).
            s1 = jnp.sum(y, axis=1, keepdims=True)           # (C, 1)
            s2 = jnp.sum(y * y, axis=1, keepdims=True)       # (C, 1)  one pass, live acc
            mean_in = s1 * inv_hw
            var_in = jnp.maximum(s2 * inv_hw - mean_in * mean_in, 0.0)
            mean_ln = jnp.sum(mean_in, axis=0, keepdims=True) * inv_c               # (1,1)
            var_ln = jnp.maximum(
                jnp.sum(var_in + mean_in * mean_in, axis=0, keepdims=True) * inv_c
                - mean_ln * mean_ln, 0.0)
            mean = (mw_ref[0] * mean_in + mw_ref[1] * mean_ln
                    + mw_ref[2] * rm_ref[...])
            var = (vw_ref[0] * var_in + vw_ref[1] * var_ln
                   + vw_ref[2] * rv_ref[...])
            scale = g_ref[...] * jax.lax.rsqrt(var + EPS)    # (C, 1) fused affine
            shift = b_ref[...] - mean * scale
            return y * scale + shift

        o = conv3x3(x, w1_ref)
        o = jnp.maximum(ssn(o, g1_ref, b1_ref, rm1_ref, rv1_ref, mw1_ref, vw1_ref), 0.0)
        o = conv3x3(o, w2_ref)
        o = ssn(o, g2_ref, b2_ref, rm2_ref, rv2_ref, mw2_ref, vw2_ref)
        # residual (downsample is None, stride == 1), ReLU, single dense store
        out_ref[0] = jnp.maximum(o + x, 0.0).astype(out_ref.dtype)

    return kernel


def basic_block(x, params):
    """x: (N, C, H, W) float32 NCHW; params: tuple from init_params."""
    (w1, w2, g1, b1, rm1, rv1, g2, b2, rm2, rv2, mw1, vw1, mw2, vw2) = params
    N, C, H, W = x.shape
    HW = H * W
    assert w1.shape == (3, 3, C, C) and w2.shape == (3, 3, C, C), \
        "BasicBlock with stride=1 / downsample=None requires inplanes == planes"

    # HWIO (3,3,Cin,Cout) -> (Cout, 9*Cin): conv becomes one MXU matmul per layer.
    w1m = w1.reshape(9 * C, C).T.astype(jnp.bfloat16)
    w2m = w2.reshape(9 * C, C).T.astype(jnp.bfloat16)
    xr = x.reshape(N, C, HW)
    masks = _tap_masks(H, W)                                  # (9, HW) f32
    col = lambda a: a.reshape(C, 1).astype(jnp.float32)

    kernel = _make_kernel(H, W, C)
    vconst = lambda shape: pl.BlockSpec(shape, lambda n, _s=shape: (0,) * len(_s))
    smem = pl.BlockSpec(memory_space=pltpu.MemorySpace.SMEM)

    out = pl.pallas_call(
        kernel,
        out_shape=jax.ShapeDtypeStruct((N, C, HW), jnp.float32),
        grid=(N,),
        in_specs=[pl.BlockSpec((1, C, HW), lambda n: (n, 0, 0)),   # x (per-sample tile)
                  vconst((9, HW)),                                 # tap masks
                  vconst((C, 9 * C)), vconst((C, 9 * C))]          # conv weights
                 + [vconst((C, 1))] * 8                            # g/b/rm/rv (x2)
                 + [smem] * 4,                                     # mw/vw blend weights
        out_specs=pl.BlockSpec((1, C, HW), lambda n: (n, 0, 0)),
        compiler_params=pltpu.CompilerParams(
            dimension_semantics=("parallel",)),                    # shard batch over TCs (v7x)
    )(xr, masks, w1m, w2m,
      col(g1), col(b1), col(rm1), col(rv1),
      col(g2), col(b2), col(rm2), col(rv2),
      mw1, vw1, mw2, vw2)
    return out.reshape(N, C, H, W)


def init_params(key, planes):
    k1, k2 = jax.random.split(key)
    std = (2.0 / (9 * planes)) ** 0.5                 # kaiming-style, deterministic
    w1 = jax.random.normal(k1, (3, 3, planes, planes), jnp.float32) * std
    w2 = jax.random.normal(k2, (3, 3, planes, planes), jnp.float32) * std
    ones_c = jnp.ones((planes,), jnp.float32)
    zeros_c = jnp.zeros((planes,), jnp.float32)
    g1, b1, rm1, rv1 = ones_c, zeros_c, zeros_c, ones_c
    # TODO(synk): SSN2d(last_gamma=True) would zero-init gamma2; keep 1.0 so the
    # conv2/sn2 path contributes to the output in this synthetic test.
    g2, b2, rm2, rv2 = ones_c, zeros_c, zeros_c, ones_c
    # importance weights over (IN, LN, BN); ones-init -> uniform after (soft/sparsest)max
    mw = jax.nn.softmax(jnp.ones((3,), jnp.float32))
    return (w1, w2, g1, b1, rm1, rv1, g2, b2, rm2, rv2, mw, mw, mw, mw)


# ----------------------- pure-JAX reference for checking -----------------------
def _conv3x3_ref(x, w):
    return jax.lax.conv_general_dilated(
        x, w, window_strides=(1, 1), padding=((1, 1), (1, 1)),
        dimension_numbers=('NCHW', 'HWIO', 'NCHW'),
        precision=jax.lax.Precision.HIGHEST)


def _ssn_ref(y, g, b, rm, rv, mw, vw):
    mean_in = y.mean(axis=(2, 3), keepdims=True)
    var_in = (y * y).mean(axis=(2, 3), keepdims=True) - mean_in ** 2
    mean_ln = mean_in.mean(axis=1, keepdims=True)
    var_ln = (var_in + mean_in ** 2).mean(axis=1, keepdims=True) - mean_ln ** 2
    mean_bn = rm.reshape(1, -1, 1, 1)
    var_bn = rv.reshape(1, -1, 1, 1)
    mean = mw[0] * mean_in + mw[1] * mean_ln + mw[2] * mean_bn
    var = vw[0] * var_in + vw[1] * var_ln + vw[2] * var_bn
    return ((y - mean) * jax.lax.rsqrt(var + EPS) * g.reshape(1, -1, 1, 1)
            + b.reshape(1, -1, 1, 1))


def basic_block_ref(x, params):
    (w1, w2, g1, b1, rm1, rv1, g2, b2, rm2, rv2, mw1, vw1, mw2, vw2) = params
    out = _conv3x3_ref(x, w1)
    out = _ssn_ref(out, g1, b1, rm1, rv1, mw1, vw1)
    out = jnp.maximum(out, 0.0)
    out = _conv3x3_ref(out, w2)
    out = _ssn_ref(out, g2, b2, rm2, rv2, mw2, vw2)
    return jnp.maximum(out + x, 0.0)


if __name__ == "__main__":
    N, C, H, W = 2, 8, 16, 16            # NCHW, same as the PyTorch module input
    key = jax.random.PRNGKey(0)
    kx, kp = jax.random.split(key)
    x = jax.random.normal(kx, (N, C, H, W), jnp.float32)
    params = init_params(kp, C)

    out = jax.block_until_ready(basic_block(x, params))
    ref = jax.block_until_ready(basic_block_ref(x, params))

    assert out.shape == (N, C, H, W)
    err = float(jnp.max(jnp.abs(out - ref)))
    # bf16 MXU inputs (f32 accumulation) vs f32/HIGHEST reference -> 2e-2 tolerance
    assert bool(jnp.allclose(out, ref, atol=2e-2, rtol=2e-2)), f"max abs err {err}"
    print("KERNEL_OK")
</pallas_src>

<mosaic_0001>
module attributes {stable_mosaic.version = 11 : i64} {
  func.func @kernel(%arg0: i32, %arg1: memref<1x8x256xf32, #tpu.memory_space<vmem>>, %arg2: memref<9x256xf32, #tpu.memory_space<vmem>>, %arg3: memref<8x72xbf16, #tpu.memory_space<vmem>>, %arg4: memref<8x72xbf16, #tpu.memory_space<vmem>>, %arg5: memref<8x1xf32, #tpu.memory_space<vmem>>, %arg6: memref<8x1xf32, #tpu.memory_space<vmem>>, %arg7: memref<8x1xf32, #tpu.memory_space<vmem>>, %arg8: memref<8x1xf32, #tpu.memory_space<vmem>>, %arg9: memref<8x1xf32, #tpu.memory_space<vmem>>, %arg10: memref<8x1xf32, #tpu.memory_space<vmem>>, %arg11: memref<8x1xf32, #tpu.memory_space<vmem>>, %arg12: memref<8x1xf32, #tpu.memory_space<vmem>>, %arg13: memref<3xf32, #tpu.memory_space<smem>>, %arg14: memref<3xf32, #tpu.memory_space<smem>>, %arg15: memref<3xf32, #tpu.memory_space<smem>>, %arg16: memref<3xf32, #tpu.memory_space<smem>>, %arg17: memref<1x8x256xf32, #tpu.memory_space<vmem>>) attributes {dimension_semantics = [#tpu.dimension_semantics<parallel>], iteration_bounds = array<i64: 2>, scalar_prefetch = 0 : i64, scratch_operands = 0 : i64, tpu.core_type = #tpu.core_type<tc>, window_params = [{transform_indices = @transform_0, window_bounds = array<i64: 1, 8, 256>}, {pipeline_mode = #tpu.pipeline_mode<synchronous>, transform_indices = @transform_1, window_bounds = array<i64: 9, 256>}, {pipeline_mode = #tpu.pipeline_mode<synchronous>, transform_indices = @transform_2, window_bounds = array<i64: 8, 72>}, {pipeline_mode = #tpu.pipeline_mode<synchronous>, transform_indices = @transform_3, window_bounds = array<i64: 8, 72>}, {pipeline_mode = #tpu.pipeline_mode<synchronous>, transform_indices = @transform_4, window_bounds = array<i64: 8, 1>}, {pipeline_mode = #tpu.pipeline_mode<synchronous>, transform_indices = @transform_5, window_bounds = array<i64: 8, 1>}, {pipeline_mode = #tpu.pipeline_mode<synchronous>, transform_indices = @transform_6, window_bounds = array<i64: 8, 1>}, {pipeline_mode = #tpu.pipeline_mode<synchronous>, transform_indices = @transform_7, window_bounds = array<i64: 8, 1>}, {pipeline_mode = #tpu.pipeline_mode<synchronous>, transform_indices = @transform_8, window_bounds = array<i64: 8, 1>}, {pipeline_mode = #tpu.pipeline_mode<synchronous>, transform_indices = @transform_9, window_bounds = array<i64: 8, 1>}, {pipeline_mode = #tpu.pipeline_mode<synchronous>, transform_indices = @transform_10, window_bounds = array<i64: 8, 1>}, {pipeline_mode = #tpu.pipeline_mode<synchronous>, transform_indices = @transform_11, window_bounds = array<i64: 8, 1>}, {transform_indices = @transform_12, window_bounds = array<i64: 3>}, {transform_indices = @transform_13, window_bounds = array<i64: 3>}, {transform_indices = @transform_14, window_bounds = array<i64: 3>}, {transform_indices = @transform_15, window_bounds = array<i64: 3>}, {transform_indices = @transform_16, window_bounds = array<i64: 1, 8, 256>}]} {
    %c0 = arith.constant 0 : index
    %c0_0 = arith.constant 0 : index
    %c0_1 = arith.constant 0 : index
    %0 = vector.load %arg1[%c0, %c0_0, %c0_1] : memref<1x8x256xf32, #tpu.memory_space<vmem>>, vector<1x8x256xf32>
    %1 = vector.shape_cast %0 : vector<1x8x256xf32> to vector<8x256xf32>
    %c0_2 = arith.constant 0 : index
    %c0_3 = arith.constant 0 : index
    %2 = vector.load %arg2[%c0_2, %c0_3] : memref<9x256xf32, #tpu.memory_space<vmem>>, vector<1x256xf32>
    %c1 = arith.constant 1 : index
    %c0_4 = arith.constant 0 : index
    %3 = vector.load %arg2[%c1, %c0_4] : memref<9x256xf32, #tpu.memory_space<vmem>>, vector<1x256xf32>
    %c2 = arith.constant 2 : index
    %c0_5 = arith.constant 0 : index
    %4 = vector.load %arg2[%c2, %c0_5] : memref<9x256xf32, #tpu.memory_space<vmem>>, vector<1x256xf32>
    %c3 = arith.constant 3 : index
    %c0_6 = arith.constant 0 : index
    %5 = vector.load %arg2[%c3, %c0_6] : memref<9x256xf32, #tpu.memory_space<vmem>>, vector<1x256xf32>
    %c5 = arith.constant 5 : index
    %c0_7 = arith.constant 0 : index
    %6 = vector.load %arg2[%c5, %c0_7] : memref<9x256xf32, #tpu.memory_space<vmem>>, vector<1x256xf32>
    %c6 = arith.constant 6 : index
    %c0_8 = arith.constant 0 : index
    %7 = vector.load %arg2[%c6, %c0_8] : memref<9x256xf32, #tpu.memory_space<vmem>>, vector<1x256xf32>
    %c7 = arith.constant 7 : index
    %c0_9 = arith.constant 0 : index
    %8 = vector.load %arg2[%c7, %c0_9] : memref<9x256xf32, #tpu.memory_space<vmem>>, vector<1x256xf32>
    %c8 = arith.constant 8 : index
    %c0_10 = arith.constant 0 : index
    %9 = vector.load %arg2[%c8, %c0_10] : memref<9x256xf32, #tpu.memory_space<vmem>>, vector<1x256xf32>
    %c17_i32 = arith.constant 17 : i32
    %10 = tpu.dynamic_rotate %1 by %c17_i32 dim 1 : vector<8x256xf32>, i32 -> vector<8x256xf32>
    %11 = vector.broadcast %2 : vector<1x256xf32> to vector<8x256xf32>
    %12 = arith.mulf %10, %11 : vector<8x256xf32>
    %c16_i32 = arith.constant 16 : i32
    %13 = tpu.dynamic_rotate %1 by %c16_i32 dim 1 : vector<8x256xf32>, i32 -> vector<8x256xf32>
    %14 = vector.broadcast %3 : vector<1x256xf32> to vector<8x256xf32>
    %15 = arith.mulf %13, %14 : vector<8x256xf32>
    %c15_i32 = arith.constant 15 : i32
    %16 = tpu.dynamic_rotate %1 by %c15_i32 dim 1 : vector<8x256xf32>, i32 -> vector<8x256xf32>
    %17 = vector.broadcast %4 : vector<1x256xf32> to vector<8x256xf32>
    %18 = arith.mulf %16, %17 : vector<8x256xf32>
    %c1_i32 = arith.constant 1 : i32
    %19 = tpu.dynamic_rotate %1 by %c1_i32 dim 1 : vector<8x256xf32>, i32 -> vector<8x256xf32>
    %20 = vector.broadcast %5 : vector<1x256xf32> to vector<8x256xf32>
    %21 = arith.mulf %19, %20 : vector<8x256xf32>
    %c255_i32 = arith.constant 255 : i32
    %22 = tpu.dynamic_rotate %1 by %c255_i32 dim 1 : vector<8x256xf32>, i32 -> vector<8x256xf32>
    %23 = vector.broadcast %6 : vector<1x256xf32> to vector<8x256xf32>
    %24 = arith.mulf %22, %23 : vector<8x256xf32>
    %c241_i32 = arith.constant 241 : i32
    %25 = tpu.dynamic_rotate %1 by %c241_i32 dim 1 : vector<8x256xf32>, i32 -> vector<8x256xf32>
    %26 = vector.broadcast %7 : vector<1x256xf32> to vector<8x256xf32>
    %27 = arith.mulf %25, %26 : vector<8x256xf32>
    %c240_i32 = arith.constant 240 : i32
    %28 = tpu.dynamic_rotate %1 by %c240_i32 dim 1 : vector<8x256xf32>, i32 -> vector<8x256xf32>
    %29 = vector.broadcast %8 : vector<1x256xf32> to vector<8x256xf32>
    %30 = arith.mulf %28, %29 : vector<8x256xf32>
    %c239_i32 = arith.constant 239 : i32
    %31 = tpu.dynamic_rotate %1 by %c239_i32 dim 1 : vector<8x256xf32>, i32 -> vector<8x256xf32>
    %32 = vector.broadcast %9 : vector<1x256xf32> to vector<8x256xf32>
    %33 = arith.mulf %31, %32 : vector<8x256xf32>
    %34 = tpu.concatenate %12, %15, %18, %21, %1, %24, %27, %30, %33 in 0 : vector<8x256xf32>, vector<8x256xf32>, vector<8x256xf32>, vector<8x256xf32>, vector<8x256xf32>, vector<8x256xf32>, vector<8x256xf32>, vector<8x256xf32>, vector<8x256xf32> -> vector<72x256xf32>
    %35 = arith.truncf %34 : vector<72x256xf32> to vector<72x256xbf16>
    %c0_11 = arith.constant 0 : index
    %c0_12 = arith.constant 0 : index
    %36 = vector.load %arg3[%c0_11, %c0_12] : memref<8x72xbf16, #tpu.memory_space<vmem>>, vector<8x72xbf16>
    %cst = arith.constant dense<0.000000e+00> : vector<8x256xf32>
    %37 = tpu.matmul %36, %35, %cst {dimension_numbers = #tpu.dot_dimension_numbers<[1], [0], [0], [1], [0, 0, 1, 1], [], []>} : vector<8x72xbf16>, vector<72x256xbf16>, vector<8x256xf32> -> vector<8x256xf32>
    %cst_13 = arith.constant dense<0.000000e+00> : vector<8xf32>
    %38 = vector.multi_reduction <add>, %37, %cst_13 [1] : vector<8x256xf32> to vector<8xf32>
    %39 = vector.shape_cast %38 : vector<8xf32> to vector<8x1xf32>
    %40 = arith.mulf %37, %37 : vector<8x256xf32>
    %cst_14 = arith.constant dense<0.000000e+00> : vector<8xf32>
    %41 = vector.multi_reduction <add>, %40, %cst_14 [1] : vector<8x256xf32> to vector<8xf32>
    %42 = vector.shape_cast %41 : vector<8xf32> to vector<8x1xf32>
    %cst_15 = arith.constant 3.906250e-03 : f32
    %43 = vector.broadcast %cst_15 : f32 to vector<8x1xf32>
    %44 = arith.mulf %39, %43 : vector<8x1xf32>
    %cst_16 = arith.constant 3.906250e-03 : f32
    %45 = vector.broadcast %cst_16 : f32 to vector<8x1xf32>
    %46 = arith.mulf %42, %45 : vector<8x1xf32>
    %47 = arith.mulf %44, %44 : vector<8x1xf32>
    %48 = arith.subf %46, %47 : vector<8x1xf32>
    %cst_17 = arith.constant 0.000000e+00 : f32
    %49 = vector.broadcast %cst_17 : f32 to vector<8x1xf32>
    %50 = arith.maximumf %48, %49 : vector<8x1xf32>
    %cst_18 = arith.constant dense<0.000000e+00> : vector<1xf32>
    %51 = vector.multi_reduction <add>, %44, %cst_18 [0] : vector<8x1xf32> to vector<1xf32>
    %52 = vector.shape_cast %51 : vector<1xf32> to vector<1x1xf32>
    %cst_19 = arith.constant 1.250000e-01 : f32
    %53 = vector.broadcast %cst_19 : f32 to vector<1x1xf32>
    %54 = arith.mulf %52, %53 : vector<1x1xf32>
    %55 = arith.mulf %44, %44 : vector<8x1xf32>
    %56 = arith.addf %50, %55 : vector<8x1xf32>
    %cst_20 = arith.constant dense<0.000000e+00> : vector<1xf32>
    %57 = vector.multi_reduction <add>, %56, %cst_20 [0] : vector<8x1xf32> to vector<1xf32>
    %58 = vector.shape_cast %57 : vector<1xf32> to vector<1x1xf32>
    %cst_21 = arith.constant 1.250000e-01 : f32
    %59 = vector.broadcast %cst_21 : f32 to vector<1x1xf32>
    %60 = arith.mulf %58, %59 : vector<1x1xf32>
    %61 = arith.mulf %54, %54 : vector<1x1xf32>
    %62 = arith.subf %60, %61 : vector<1x1xf32>
    %cst_22 = arith.constant 0.000000e+00 : f32
    %63 = vector.broadcast %cst_22 : f32 to vector<1x1xf32>
    %64 = arith.maximumf %62, %63 : vector<1x1xf32>
    %c0_23 = arith.constant 0 : index
    %65 = memref.load %arg13[%c0_23] : memref<3xf32, #tpu.memory_space<smem>>
    %66 = vector.broadcast %65 : f32 to vector<8x1xf32>
    %67 = arith.mulf %66, %44 : vector<8x1xf32>
    %c1_24 = arith.constant 1 : index
    %68 = memref.load %arg13[%c1_24] : memref<3xf32, #tpu.memory_space<smem>>
    %69 = vector.broadcast %68 : f32 to vector<1x1xf32>
    %70 = arith.mulf %69, %54 : vector<1x1xf32>
    %71 = vector.broadcast %70 : vector<1x1xf32> to vector<8x1xf32>
    %72 = arith.addf %67, %71 : vector<8x1xf32>
    %c2_25 = arith.constant 2 : index
    %73 = memref.load %arg13[%c2_25] : memref<3xf32, #tpu.memory_space<smem>>
    %c0_26 = arith.constant 0 : index
    %c0_27 = arith.constant 0 : index
    %74 = vector.load %arg7[%c0_26, %c0_27] : memref<8x1xf32, #tpu.memory_space<vmem>>, vector<8x1xf32>
    %75 = vector.broadcast %73 : f32 to vector<8x1xf32>
    %76 = arith.mulf %75, %74 : vector<8x1xf32>
    %77 = arith.addf %72, %76 : vector<8x1xf32>
    %c0_28 = arith.constant 0 : index
    %78 = memref.load %arg14[%c0_28] : memref<3xf32, #tpu.memory_space<smem>>
    %79 = vector.broadcast %78 : f32 to vector<8x1xf32>
    %80 = arith.mulf %79, %50 : vector<8x1xf32>
    %c1_29 = arith.constant 1 : index
    %81 = memref.load %arg14[%c1_29] : memref<3xf32, #tpu.memory_space<smem>>
    %82 = vector.broadcast %81 : f32 to vector<1x1xf32>
    %83 = arith.mulf %82, %64 : vector<1x1xf32>
    %84 = vector.broadcast %83 : vector<1x1xf32> to vector<8x1xf32>
    %85 = arith.addf %80, %84 : vector<8x1xf32>
    %c2_30 = arith.constant 2 : index
    %86 = memref.load %arg14[%c2_30] : memref<3xf32, #tpu.memory_space<smem>>
    %c0_31 = arith.constant 0 : index
    %c0_32 = arith.constant 0 : index
    %87 = vector.load %arg8[%c0_31, %c0_32] : memref<8x1xf32, #tpu.memory_space<vmem>>, vector<8x1xf32>
    %88 = vector.broadcast %86 : f32 to vector<8x1xf32>
    %89 = arith.mulf %88, %87 : vector<8x1xf32>
    %90 = arith.addf %85, %89 : vector<8x1xf32>
    %c0_33 = arith.constant 0 : index
    %c0_34 = arith.constant 0 : index
    %91 = vector.load %arg5[%c0_33, %c0_34] : memref<8x1xf32, #tpu.memory_space<vmem>>, vector<8x1xf32>
    %cst_35 = arith.constant 9.99999974E-6 : f32
    %92 = vector.broadcast %cst_35 : f32 to vector<8x1xf32>
    %93 = arith.addf %90, %92 : vector<8x1xf32>
    %94 = math.rsqrt %93 : vector<8x1xf32>
    %95 = arith.mulf %91, %94 : vector<8x1xf32>
    %c0_36 = arith.constant 0 : index
    %c0_37 = arith.constant 0 : index
    %96 = vector.load %arg6[%c0_36, %c0_37] : memref<8x1xf32, #tpu.memory_space<vmem>>, vector<8x1xf32>
    %97 = arith.mulf %77, %95 : vector<8x1xf32>
    %98 = arith.subf %96, %97 : vector<8x1xf32>
    %99 = vector.broadcast %95 : vector<8x1xf32> to vector<8x256xf32>
    %100 = arith.mulf %37, %99 : vector<8x256xf32>
    %101 = vector.broadcast %98 : vector<8x1xf32> to vector<8x256xf32>
    %102 = arith.addf %100, %101 : vector<8x256xf32>
    %cst_38 = arith.constant 0.000000e+00 : f32
    %103 = vector.broadcast %cst_38 : f32 to vector<8x256xf32>
    %104 = arith.maximumf %102, %103 : vector<8x256xf32>
    %c17_i32_39 = arith.constant 17 : i32
    %105 = tpu.dynamic_rotate %104 by %c17_i32_39 dim 1 : vector<8x256xf32>, i32 -> vector<8x256xf32>
    %106 = vector.broadcast %2 : vector<1x256xf32> to vector<8x256xf32>
    %107 = arith.mulf %105, %106 : vector<8x256xf32>
    %c16_i32_40 = arith.constant 16 : i32
    %108 = tpu.dynamic_rotate %104 by %c16_i32_40 dim 1 : vector<8x256xf32>, i32 -> vector<8x256xf32>
    %109 = vector.broadcast %3 : vector<1x256xf32> to vector<8x256xf32>
    %110 = arith.mulf %108, %109 : vector<8x256xf32>
    %c15_i32_41 = arith.constant 15 : i32
    %111 = tpu.dynamic_rotate %104 by %c15_i32_41 dim 1 : vector<8x256xf32>, i32 -> vector<8x256xf32>
    %112 = vector.broadcast %4 : vector<1x256xf32> to vector<8x256xf32>
    %113 = arith.mulf %111, %112 : vector<8x256xf32>
    %c1_i32_42 = arith.constant 1 : i32
    %114 = tpu.dynamic_rotate %104 by %c1_i32_42 dim 1 : vector<8x256xf32>, i32 -> vector<8x256xf32>
    %115 = vector.broadcast %5 : vector<1x256xf32> to vector<8x256xf32>
    %116 = arith.mulf %114, %115 : vector<8x256xf32>
    %c255_i32_43 = arith.constant 255 : i32
    %117 = tpu.dynamic_rotate %104 by %c255_i32_43 dim 1 : vector<8x256xf32>, i32 -> vector<8x256xf32>
    %118 = vector.broadcast %6 : vector<1x256xf32> to vector<8x256xf32>
    %119 = arith.mulf %117, %118 : vector<8x256xf32>
    %c241_i32_44 = arith.constant 241 : i32
    %120 = tpu.dynamic_rotate %104 by %c241_i32_44 dim 1 : vector<8x256xf32>, i32 -> vector<8x256xf32>
    %121 = vector.broadcast %7 : vector<1x256xf32> to vector<8x256xf32>
    %122 = arith.mulf %120, %121 : vector<8x256xf32>
    %c240_i32_45 = arith.constant 240 : i32
    %123 = tpu.dynamic_rotate %104 by %c240_i32_45 dim 1 : vector<8x256xf32>, i32 -> vector<8x256xf32>
    %124 = vector.broadcast %8 : vector<1x256xf32> to vector<8x256xf32>
    %125 = arith.mulf %123, %124 : vector<8x256xf32>
    %c239_i32_46 = arith.constant 239 : i32
    %126 = tpu.dynamic_rotate %104 by %c239_i32_46 dim 1 : vector<8x256xf32>, i32 -> vector<8x256xf32>
    %127 = vector.broadcast %9 : vector<1x256xf32> to vector<8x256xf32>
    %128 = arith.mulf %126, %127 : vector<8x256xf32>
    %129 = tpu.concatenate %107, %110, %113, %116, %104, %119, %122, %125, %128 in 0 : vector<8x256xf32>, vector<8x256xf32>, vector<8x256xf32>, vector<8x256xf32>, vector<8x256xf32>, vector<8x256xf32>, vector<8x256xf32>, vector<8x256xf32>, vector<8x256xf32> -> vector<72x256xf32>
    %130 = arith.truncf %129 : vector<72x256xf32> to vector<72x256xbf16>
    %c0_47 = arith.constant 0 : index
    %c0_48 = arith.constant 0 : index
    %131 = vector.load %arg4[%c0_47, %c0_48] : memref<8x72xbf16, #tpu.memory_space<vmem>>, vector<8x72xbf16>
    %cst_49 = arith.constant dense<0.000000e+00> : vector<8x256xf32>
    %132 = tpu.matmul %131, %130, %cst_49 {dimension_numbers = #tpu.dot_dimension_numbers<[1], [0], [0], [1], [0, 0, 1, 1], [], []>} : vector<8x72xbf16>, vector<72x256xbf16>, vector<8x256xf32> -> vector<8x256xf32>
    %cst_50 = arith.constant dense<0.000000e+00> : vector<8xf32>
    %133 = vector.multi_reduction <add>, %132, %cst_50 [1] : vector<8x256xf32> to vector<8xf32>
    %134 = vector.shape_cast %133 : vector<8xf32> to vector<8x1xf32>
    %135 = arith.mulf %132, %132 : vector<8x256xf32>
    %cst_51 = arith.constant dense<0.000000e+00> : vector<8xf32>
    %136 = vector.multi_reduction <add>, %135, %cst_51 [1] : vector<8x256xf32> to vector<8xf32>
    %137 = vector.shape_cast %136 : vector<8xf32> to vector<8x1xf32>
    %cst_52 = arith.constant 3.906250e-03 : f32
    %138 = vector.broadcast %cst_52 : f32 to vector<8x1xf32>
    %139 = arith.mulf %134, %138 : vector<8x1xf32>
    %cst_53 = arith.constant 3.906250e-03 : f32
    %140 = vector.broadcast %cst_53 : f32 to vector<8x1xf32>
    %141 = arith.mulf %137, %140 : vector<8x1xf32>
    %142 = arith.mulf %139, %139 : vector<8x1xf32>
    %143 = arith.subf %141, %142 : vector<8x1xf32>
    %cst_54 = arith.constant 0.000000e+00 : f32
    %144 = vector.broadcast %cst_54 : f32 to vector<8x1xf32>
    %145 = arith.maximumf %143, %144 : vector<8x1xf32>
    %cst_55 = arith.constant dense<0.000000e+00> : vector<1xf32>
    %146 = vector.multi_reduction <add>, %139, %cst_55 [0] : vector<8x1xf32> to vector<1xf32>
    %147 = vector.shape_cast %146 : vector<1xf32> to vector<1x1xf32>
    %cst_56 = arith.constant 1.250000e-01 : f32
    %148 = vector.broadcast %cst_56 : f32 to vector<1x1xf32>
    %149 = arith.mulf %147, %148 : vector<1x1xf32>
    %150 = arith.mulf %139, %139 : vector<8x1xf32>
    %151 = arith.addf %145, %150 : vector<8x1xf32>
    %cst_57 = arith.constant dense<0.000000e+00> : vector<1xf32>
    %152 = vector.multi_reduction <add>, %151, %cst_57 [0] : vector<8x1xf32> to vector<1xf32>
    %153 = vector.shape_cast %152 : vector<1xf32> to vector<1x1xf32>
    %cst_58 = arith.constant 1.250000e-01 : f32
    %154 = vector.broadcast %cst_58 : f32 to vector<1x1xf32>
    %155 = arith.mulf %153, %154 : vector<1x1xf32>
    %156 = arith.mulf %149, %149 : vector<1x1xf32>
    %157 = arith.subf %155, %156 : vector<1x1xf32>
    %cst_59 = arith.constant 0.000000e+00 : f32
    %158 = vector.broadcast %cst_59 : f32 to vector<1x1xf32>
    %159 = arith.maximumf %157, %158 : vector<1x1xf32>
    %c0_60 = arith.constant 0 : index
    %160 = memref.load %arg15[%c0_60] : memref<3xf32, #tpu.memory_space<smem>>
    %161 = vector.broadcast %160 : f32 to vector<8x1xf32>
    %162 = arith.mulf %161, %139 : vector<8x1xf32>
    %c1_61 = arith.constant 1 : index
    %163 = memref.load %arg15[%c1_61] : memref<3xf32, #tpu.memory_space<smem>>
    %164 = vector.broadcast %163 : f32 to vector<1x1xf32>
    %165 = arith.mulf %164, %149 : vector<1x1xf32>
    %166 = vector.broadcast %165 : vector<1x1xf32> to vector<8x1xf32>
    %167 = arith.addf %162, %166 : vector<8x1xf32>
    %c2_62 = arith.constant 2 : index
    %168 = memref.load %arg15[%c2_62] : memref<3xf32, #tpu.memory_space<smem>>
    %c0_63 = arith.constant 0 : index
    %c0_64 = arith.constant 0 : index
    %169 = vector.load %arg11[%c0_63, %c0_64] : memref<8x1xf32, #tpu.memory_space<vmem>>, vector<8x1xf32>
    %170 = vector.broadcast %168 : f32 to vector<8x1xf32>
    %171 = arith.mulf %170, %169 : vector<8x1xf32>
    %172 = arith.addf %167, %171 : vector<8x1xf32>
    %c0_65 = arith.constant 0 : index
    %173 = memref.load %arg16[%c0_65] : memref<3xf32, #tpu.memory_space<smem>>
    %174 = vector.broadcast %173 : f32 to vector<8x1xf32>
    %175 = arith.mulf %174, %145 : vector<8x1xf32>
    %c1_66 = arith.constant 1 : index
    %176 = memref.load %arg16[%c1_66] : memref<3xf32, #tpu.memory_space<smem>>
    %177 = vector.broadcast %176 : f32 to vector<1x1xf32>
    %178 = arith.mulf %177, %159 : vector<1x1xf32>
    %179 = vector.broadcast %178 : vector<1x1xf32> to vector<8x1xf32>
    %180 = arith.addf %175, %179 : vector<8x1xf32>
    %c2_67 = arith.constant 2 : index
    %181 = memref.load %arg16[%c2_67] : memref<3xf32, #tpu.memory_space<smem>>
    %c0_68 = arith.constant 0 : index
    %c0_69 = arith.constant 0 : index
    %182 = vector.load %arg12[%c0_68, %c0_69] : memref<8x1xf32, #tpu.memory_space<vmem>>, vector<8x1xf32>
    %183 = vector.broadcast %181 : f32 to vector<8x1xf32>
    %184 = arith.mulf %183, %182 : vector<8x1xf32>
    %185 = arith.addf %180, %184 : vector<8x1xf32>
    %c0_70 = arith.constant 0 : index
    %c0_71 = arith.constant 0 : index
    %186 = vector.load %arg9[%c0_70, %c0_71] : memref<8x1xf32, #tpu.memory_space<vmem>>, vector<8x1xf32>
    %cst_72 = arith.constant 9.99999974E-6 : f32
    %187 = vector.broadcast %cst_72 : f32 to vector<8x1xf32>
    %188 = arith.addf %185, %187 : vector<8x1xf32>
    %189 = math.rsqrt %188 : vector<8x1xf32>
    %190 = arith.mulf %186, %189 : vector<8x1xf32>
    %c0_73 = arith.constant 0 : index
    %c0_74 = arith.constant 0 : index
    %191 = vector.load %arg10[%c0_73, %c0_74] : memref<8x1xf32, #tpu.memory_space<vmem>>, vector<8x1xf32>
    %192 = arith.mulf %172, %190 : vector<8x1xf32>
    %193 = arith.subf %191, %192 : vector<8x1xf32>
    %194 = vector.broadcast %190 : vector<8x1xf32> to vector<8x256xf32>
    %195 = arith.mulf %132, %194 : vector<8x256xf32>
    %196 = vector.broadcast %193 : vector<8x1xf32> to vector<8x256xf32>
    %197 = arith.addf %195, %196 : vector<8x256xf32>
    %198 = arith.addf %197, %1 : vector<8x256xf32>
    %cst_75 = arith.constant 0.000000e+00 : f32
    %199 = vector.broadcast %cst_75 : f32 to vector<8x256xf32>
    %200 = arith.maximumf %198, %199 : vector<8x256xf32>
    %c0_76 = arith.constant 0 : index
    %c0_77 = arith.constant 0 : index
    %c0_78 = arith.constant 0 : index
    %201 = vector.load %arg17[%c0_76, %c0_77, %c0_78] : memref<1x8x256xf32, #tpu.memory_space<vmem>>, vector<1x8x256xf32>
    %202 = vector.shape_cast %201 : vector<1x8x256xf32> to vector<8x256xf32>
    %203 = vector.shape_cast %200 : vector<8x256xf32> to vector<1x8x256xf32>
    tpu.vector_store %arg17[%c0_76, %c0_77, %c0_78], %203 {strides = array<i32>} : memref<1x8x256xf32, #tpu.memory_space<vmem>>, vector<1x8x256xf32>,
    return
  }
  func.func @transform_0(%arg0: i32) -> (i32, i32, i32) {
    %c0_i32 = arith.constant 0 : i32
    %c0_i32_0 = arith.constant 0 : i32
    %c0_i32_1 = arith.constant 0 : i32
    return %arg0, %c0_i32, %c0_i32_0 : i32, i32, i32
  }
  func.func @transform_1(%arg0: i32) -> (i32, i32) {
    %c0_i32 = arith.constant 0 : i32
    %c0_i32_0 = arith.constant 0 : i32
    %c0_i32_1 = arith.constant 0 : i32
    return %c0_i32, %c0_i32_0 : i32, i32
  }
  func.func @transform_2(%arg0: i32) -> (i32, i32) {
    %c0_i32 = arith.constant 0 : i32
    %c0_i32_0 = arith.constant 0 : i32
    %c0_i32_1 = arith.constant 0 : i32
    return %c0_i32, %c0_i32_0 : i32, i32
  }
  func.func @transform_3(%arg0: i32) -> (i32, i32) {
    %c0_i32 = arith.constant 0 : i32
    %c0_i32_0 = arith.constant 0 : i32
    %c0_i32_1 = arith.constant 0 : i32
    return %c0_i32, %c0_i32_0 : i32, i32
  }
  func.func @transform_4(%arg0: i32) -> (i32, i32) {
    %c0_i32 = arith.constant 0 : i32
    %c0_i32_0 = arith.constant 0 : i32
    %c0_i32_1 = arith.constant 0 : i32
    return %c0_i32, %c0_i32_0 : i32, i32
  }
  func.func @transform_5(%arg0: i32) -> (i32, i32) {
    %c0_i32 = arith.constant 0 : i32
    %c0_i32_0 = arith.constant 0 : i32
    %c0_i32_1 = arith.constant 0 : i32
    return %c0_i32, %c0_i32_0 : i32, i32
  }
  func.func @transform_6(%arg0: i32) -> (i32, i32) {
    %c0_i32 = arith.constant 0 : i32
    %c0_i32_0 = arith.constant 0 : i32
    %c0_i32_1 = arith.constant 0 : i32
    return %c0_i32, %c0_i32_0 : i32, i32
  }
  func.func @transform_7(%arg0: i32) -> (i32, i32) {
    %c0_i32 = arith.constant 0 : i32
    %c0_i32_0 = arith.constant 0 : i32
    %c0_i32_1 = arith.constant 0 : i32
    return %c0_i32, %c0_i32_0 : i32, i32
  }
  func.func @transform_8(%arg0: i32) -> (i32, i32) {
    %c0_i32 = arith.constant 0 : i32
    %c0_i32_0 = arith.constant 0 : i32
    %c0_i32_1 = arith.constant 0 : i32
    return %c0_i32, %c0_i32_0 : i32, i32
  }
  func.func @transform_9(%arg0: i32) -> (i32, i32) {
    %c0_i32 = arith.constant 0 : i32
    %c0_i32_0 = arith.constant 0 : i32
    %c0_i32_1 = arith.constant 0 : i32
    return %c0_i32, %c0_i32_0 : i32, i32
  }
  func.func @transform_10(%arg0: i32) -> (i32, i32) {
    %c0_i32 = arith.constant 0 : i32
    %c0_i32_0 = arith.constant 0 : i32
    %c0_i32_1 = arith.constant 0 : i32
    return %c0_i32, %c0_i32_0 : i32, i32
  }
  func.func @transform_11(%arg0: i32) -> (i32, i32) {
    %c0_i32 = arith.constant 0 : i32
    %c0_i32_0 = arith.constant 0 : i32
    %c0_i32_1 = arith.constant 0 : i32
    return %c0_i32, %c0_i32_0 : i32, i32
  }
  func.func @transform_12(%arg0: i32) -> i32 {
    %c0_i32 = arith.constant 0 : i32
    %c0_i32_0 = arith.constant 0 : i32
    return %c0_i32 : i32
  }
  func.func @transform_13(%arg0: i32) -> i32 {
    %c0_i32 = arith.constant 0 : i32
    %c0_i32_0 = arith.constant 0 : i32
    return %c0_i32 : i32
  }
  func.func @transform_14(%arg0: i32) -> i32 {
    %c0_i32 = arith.constant 0 : i32
    %c0_i32_0 = arith.constant 0 : i32
    return %c0_i32 : i32
  }
  func.func @transform_15(%arg0: i32) -> i32 {
    %c0_i32 = arith.constant 0 : i32
    %c0_i32_0 = arith.constant 0 : i32
    return %c0_i32 : i32
  }
  func.func @transform_16(%arg0: i32) -> (i32, i32, i32) {
    %c0_i32 = arith.constant 0 : i32
    %c0_i32_0 = arith.constant 0 : i32
    %c0_i32_1 = arith.constant 0 : i32
    return %arg0, %c0_i32, %c0_i32_0 : i32, i32, i32
  }
}

</mosaic_0001>

<bundles_post_ra>
// kernel: tpu_custom_call.1
= control target key start
LH: loop header
LB: loop body
LE: loop exit
PB: predicated region body
PF: predicated region fallthrough
CT: control target
= control target key end

     0   :  { %s2067_s0 = inlined_call_operand.vmem [shape: f32[2,8,256], index: 0, kind: input, shape index: {}]   ;;  %s2068_s1 = inlined_call_operand.vmem [shape: f32[9,256], index: 1, kind: input, shape index: {}]   ;;  %s2069_s2 = inlined_call_operand.vmem [shape: bf16[8,72], index: 2, kind: input, shape index: {}]   ;;  %s2070_s3 = inlined_call_operand.vmem [shape: bf16[8,72], index: 3, kind: input, shape index: {}]   ;;  %s2071_s4 = inlined_call_operand.vmem [shape: f32[8,1], index: 4, kind: input, shape index: {}]   ;;  %s2072_s5 = inlined_call_operand.vmem [shape: f32[8,1], index: 5, kind: input, shape index: {}]   ;;  %s2073_s6 = inlined_call_operand.vmem [shape: f32[8,1], index: 6, kind: input, shape index: {}]   ;;  %s2074_s7 = inlined_call_operand.vmem [shape: f32[8,1], index: 7, kind: input, shape index: {}]   ;;  %s2075_s8 = inlined_call_operand.vmem [shape: f32[8,1], index: 8, kind: input, shape index: {}]   ;;  %s2076_s9 = inlined_call_operand.vmem [shape: f32[8,1], index: 9, kind: input, shape index: {}]   ;;  %s2077_s10 = inlined_call_operand.vmem [shape: f32[8,1], index: 10, kind: input, shape index: {}]   ;;  %s2078_s11 = inlined_call_operand.vmem [shape: f32[8,1], index: 11, kind: input, shape index: {}]   ;;  %s2079_s12 = inlined_call_operand.vmem [shape: f32[3], index: 12, kind: input, shape index: {}]   ;;  %s2080_s13 = inlined_call_operand.vmem [shape: f32[3], index: 13, kind: input, shape index: {}]   ;;  %s2081_s14 = inlined_call_operand.vmem [shape: f32[3], index: 14, kind: input, shape index: {}]   ;;  %s2082_s15 = inlined_call_operand.vmem [shape: f32[3], index: 15, kind: input, shape index: {}]   ;;  %s2083_s16 = inlined_call_operand.hbm [shape: f32[2,8,256], index: 16, kind: output, shape index: {}]  }
   0x1   :  { %2102 = sst [smem:[#allocation20_spill]] %s2067_s0 }
   0x2   :  { %2103 = sst [smem:[#allocation21_spill]] %s2080_s13 }
   0x3   :  { %21 = vsyncpa [#allocation4], 0 }
   0x4   :  { %22 = vsyncpa [#allocation6], 0 }
   0x5   :  { %23 = vsyncpa [#allocation9], 0 }
   0x6   :  { %24 = vsyncpa [#allocation3], 0 }
   0x7   :  { %26 = vsyncpa [#allocation3 + $0x1], 0  ;;  %s1586_s21 = smov 0   ;;  %s1588_s22 = smov 0  }
   0x8   :  { %s1590_s23 = smov 0   ;;  %s1592_s24 = smov 0  }
   0x9 LB: > { %2104 = sst [smem:[#allocation15_spill]] %s1473_s21  ;;  %s1607_s25 = sadd.s32 4294967295, %s1485_s24   ;;  %s1485_s24 = sphi %s1592_s24, %s2131_s24   ;;  %s1481_s23 = sphi %s1590_s23, %s2133_s23   ;;  %s1477_s22 = sphi %s1588_s22, %s2135_s22   ;;  %s1473_s21 = sphi %s1586_s21, %s2134_s21  }
   0xa   : > { %2105 = sst [smem:[#allocation16_spill]] %s1481_s23  ;;  %s1215_s26 = sadd.s32 4294967294, %s1485_s24  }
   0xb   : > { %s1611_s27 = sadd.s32 1, %s1485_s24   ;;  %s380_s28 = sadd.s32 1, %s1481_s23 }
   0xc   : > { %2106 = sst [smem:[#allocation17_spill]] %s1611_s27  ;;  %s377_s29 = ssub.s32 %s1485_s24, %s1611_s27 }
   0xd   : > { %p390_p0 = scmp.ne.s32.totalorder %s1481_s23, %s1477_s22  ;;  %p378_p1 = scmp.eq.s32.totalorder %s377_s29, 0 }
   0xe   : > { %p391_p2 = scmp.eq.s32.totalorder %s1607_s25, 1  ;;  %p396_p3 = scmp.ne.s32.totalorder %s1477_s22, %s1473_s21 }
   0xf   : > { %p397_p4 = scmp.eq.s32.totalorder %s1215_s26, 1  ;;  %p1216_p7 = scmp.ge.s32.totalorder %s1485_s24, 1 }
  0x10   : > { %s1622_s30 = scalar_select %p378_p1, %s1481_s23, %s380_s28  }
  0x11   : > { %p1624_p5 = por %p391_p2, %p390_p0  ;;  %p1628_p6 = por %p397_p4, %p396_p3 }
  0x12   : > { %2107 = sst [smem:[#allocation18_spill]] %s1622_s30  ;;  %p404_p8 = scmp.lt.s32.totalorder %s1485_s24, 3 }
  0x13   : > { %s2108_s0 = scalar_select %p1624_p5, 1, 0 }
  0x14   : > { %s2109_s17 = scalar_select %p1628_p6, 1, 0 }
  0x15   : > { %p2089_p9 = scmp.eq.s32.totalorder %s1607_s25, 0  ;;  %p1635_p10 = pnand %p1216_p7, %p404_p8 }
  0x16   : > { %2110 = sst [smem:[#allocation19_spill]] %s2109_s17  ;;  %s2112_s13 = sld [smem:[#allocation21_spill]] }
  0x17   : > { %s2111_s18 = scalar_select %p1635_p10, 1, 0 }
  0x18   : > { %p1274_p11 = pneg %p1635_p10  ;;  %s450_s30 = sshll.u32 %s2079_s12, 4  ;;  %s451_s30 = int_to_ptr.vmem [resolvable:$true] %s450_s30 }
  0x19   : > { %s472_s19 = sshll.u32 %s2081_s14, 4  ;;  %s483_s21 = sshll.u32 %s2082_s15, 4  ;;  %s1656_s19 = int_to_ptr.vmem [resolvable:$true] %s472_s19  ;;  %s484_s21 = int_to_ptr.vmem [resolvable:$true] %s483_s21 }
  0x1a   : > { %p1649_p12 = pnand %p2089_p9, %p1274_p11 }
  0x1c   : > { %s461_s26 = sshll.u32 %s2112_s13, 4  ;;  %p1353_p0 = pneg %p1649_p12  ;;  %s462_s26 = int_to_ptr.vmem [resolvable:$true] %s461_s26 }
  0x1d   : > { %s1351_s28 = scalar_lea.vmem %s462_s26, 16  ;;  %p1359_p3 = scmp.lt.s32.totalorder %s462_s26, %s462_s26 }
  0x1e   : > { %p1352_p13 = scmp.ne.s32.totalorder %s462_s26, %s1351_s28  ;;  %p1360_p4 = scmp.lt.s32.totalorder %s1351_s28, %s1351_s28 }
  0x20   : > { %p1354_p1 = pnand %p1353_p0, %p1352_p13  ;;  %p1361_p7 = por %p1360_p4, %p1359_p3 }
  0x22   : > { %p1355_p2 = pneg %p1354_p1 }
  0x24   : > { %p1362_p8 = pnand %p1361_p7, %p1355_p2 }
  0x26   : > { %1365 = shalt.err (!%p1362_p8)
}
  0x27   : > { %s1487_s27 = smov [#allocation5]   ;;  %s1366_s13 = scalar_lea.vmem %s451_s30, 16 }
  0x28   : > { %1280 = dma.vmem_to_smem (!%p1649_p12), %s462_s26, 16, %s1487_s27, [#allocation6]  }
  0x29   : > { %p1367_p11 = scmp.ne.s32.totalorder %s451_s30, %s1366_s13  ;;  %p1374_p5 = scmp.lt.s32.totalorder %s451_s30, %s451_s30 }
  0x2a   : > { %p1375_p10 = scmp.lt.s32.totalorder %s1366_s13, %s1366_s13 }
  0x2b   : > { %p1369_p9 = pnand %p1367_p11, %p1353_p0 }
  0x2c   : > { %p1376_p13 = por %p1375_p10, %p1374_p5 }
  0x2d   : > { %p1370_p6 = pneg %p1369_p9 }
  0x2f   : > { %p1377_p1 = pnand %p1376_p13, %p1370_p6 }
  0x31   : > { %1380 = shalt.err (!%p1377_p1)
}
  0x32   : > { %s1488_s17 = smov [#allocation2]   ;;  %s1381_s26 = scalar_lea.vmem %s1656_s19, 16 }
  0x33   : > { %1277 = dma.vmem_to_smem (!%p1649_p12), %s451_s30, 16, %s1488_s17, [#allocation4]  }
  0x34   : > { %p1382_p2 = scmp.ne.s32.totalorder %s1656_s19, %s1381_s26  ;;  %p1389_p9 = scmp.lt.s32.totalorder %s1656_s19, %s1656_s19 }
  0x35   : > { %p1390_p7 = scmp.lt.s32.totalorder %s1381_s26, %s1381_s26 }
  0x36   : > { %p1384_p3 = pnand %p1382_p2, %p1353_p0 }
  0x37   : > { %p1391_p5 = por %p1390_p7, %p1389_p9 }
  0x38   : > { %p1385_p4 = pneg %p1384_p3 }
  0x3a   : > { %p1392_p6 = pnand %p1391_p5, %p1385_p4 }
  0x3c   : > { %1395 = shalt.err (!%p1392_p6)
}
  0x3d   : > { %s1489_s29 = smov [#allocation7]   ;;  %s1396_s28 = scalar_lea.vmem %s484_s21, 16 }
  0x3e   : > { %1283 = dma.vmem_to_smem (!%p1649_p12), %s1656_s19, 16, %s1489_s29, [#allocation6]  }
  0x3f   : > { %p1397_p10 = scmp.ne.s32.totalorder %s484_s21, %s1396_s28  ;;  %p1404_p13 = scmp.lt.s32.totalorder %s484_s21, %s484_s21 }
  0x40   : > { %p1405_p1 = scmp.lt.s32.totalorder %s1396_s28, %s1396_s28 }
  0x41   : > { %p1399_p8 = pnand %p1397_p10, %p1353_p0 }
  0x42   : > { %p1406_p2 = por %p1405_p1, %p1404_p13 }
  0x43   : > { %p1400_p11 = pneg %p1399_p8 }
  0x45   : > { %p1407_p3 = pnand %p1406_p2, %p1400_p11 }
  0x47   : > { %1410 = shalt.err (!%p1407_p3)
}
  0x48   : > { %s1490_s27 = smov [#allocation8]   ;;  %p2114_p4 = scmp.ne.s32.totalorder %s2111_s18, 0 }
  0x49   : > { %1286 = dma.vmem_to_smem (!%p1649_p12), %s484_s21, 16, %s1490_s27, [#allocation9]  }
  0x4a   : > { %504 = sbr.rel (%p2114_p4) target bundleno = 1516 (0x5ec), region = 84  ;;  %p2115_p9 = scmp.eq.s32.totalorder (!%p2114_p4), %s1607_s25, 0 }
  0x51   : > { %1456 = dma.done.wait (%p2115_p9), [#allocation4], 16   ;;  %p2116_p7 = pmov %p2115_p9 }
  0x53   : > { %1458 = vsyncadd (%p2116_p7), [#allocation4], 4294967280  ;;  %p2117_p0 = pmov %p2116_p7 }
  0x55   : > { %1460 = dma.done.wait (%p2117_p0), [#allocation6], 32   ;;  %p2118_p5 = pmov %p2117_p0 }
  0x56   : > { %p2119_p6 = pmov %p2117_p0 }
  0x57   : > { %1462 = vsyncadd (%p2118_p5), [#allocation6], 4294967264 }
  0x58   : > { %1464 = dma.done.wait (%p2119_p6), [#allocation9], 16   ;;  %p2120_p12 = pmov %p2117_p0 }
  0x5a   : > { %1466 = vsyncadd (%p2120_p12), [#allocation9], 4294967280 }
  0x5b   : > { %522 = sfence }
  0x5c   : > { %p567_p10 = scmp.lt.s32.totalorder %s1607_s25, 1  ;;  %s2121_s13 = sld [smem:[#allocation20_spill]]  ;;  %v1497_v2 = vmov 0   ;;  %v594_v3 = vlaneseq  ;;  %v1230_v8 = vld [vmem:[%s2068_s1 + $0x1] ss:$8 sm:$0x3] }
  0x5d   : > { %s2098_s26 = smov 16   ;;  %s1492_s29 = smov 17   ;;  %806 = vmatprep.mubr.bf16.mxu0 %v1497_v2  ;;  %1345 = vset.pattern.permute.xlu0 %v1497_v2  ;;  %v575_v9 = vld [vmem:[%s2068_s1] ss:$8 sm:$0x3]  ;;  %vm767_vm8 = vcmask 1043456  }
  0x5e   : > { %s568_s21 = scalar_select %p567_p10, %s1607_s25, 1  ;;  %1346 = vset.pattern.permute.xlu1 %v1497_v2  ;;  %1009 = vmatprep.mubr.bf16.mxu1 %v1497_v2  ;;  %v601_v4 = vshrl.u32 %v594_v3, 7  ;;  %v1747_v5 = vand.u32 127, %v594_v3  ;;  %v1231_v26 = vld [vmem:[%s2068_s1 + $0x2] ss:$8 sm:$0x3] }
  0x5f   : > { %s2092_s20 = smov 15   ;;  %s1494_s30 = smov 1   ;;  %v1232_v27 = vld [vmem:[%s2068_s1 + $0x3] ss:$8 sm:$0x3]  ;;  %vm763_vm9 = vcmask 588800  }
  0x60   : > { %s1254_s23 = sshll.u32 %s568_s21, 4  ;;  %s1495_s28 = smov 127   ;;  %v1749_v6 = vsub.s32 0, %v601_v4  ;;  %v1751_v7 = vsub.s32 1, %v601_v4  ;;  %vm616_vm0 = vcmp.lt.s32.totalorder %v1747_v5, 16  ;;  %vm596_vm1 = vcmp.lt.s32.totalorder %v1747_v5, 17 }
  0x61   : > { %s2100_s27 = smov 113   ;;  %s2096_s21 = smov 112   ;;  %vm636_vm2 = vcmp.lt.s32.totalorder %v1747_v5, 15  ;;  %vm656_vm3 = vcmp.lt.s32.totalorder %v1747_v5, 1  ;;  %vm676_vm4 = vcmp.lt.s32.totalorder %v1747_v5, 127  ;;  %vm696_vm5 = vcmp.lt.s32.totalorder %v1747_v5, 113 }
  0x62   : > { %s571_s17 = scalar_lea.vmem %s2121_s13, %s1254_s23  ;;  %s2094_s23 = smov 111   ;;  %v1762_v12 = vrot.slane %v1230_v8, %v1749_v6  ;;  %v1765_v13 = vrot.slane %v575_v9, %v1749_v6  ;;  %v1768_v14 = vrot.slane %v575_v9, %v1751_v7  ;;  %v1771_v15 = vrot.slane %v1230_v8, %v1751_v7  ;;  %v1233_v36 = vld [vmem:[%s2068_s1 + $0x5] ss:$8 sm:$0x3] }
  0x63   : > { %v1711_v0 = vld [vmem:[%s571_s17] sm:$0xff]  ;;  %v1717_v1 = vld [vmem:[%s571_s17 + $0x8] sm:$0xff]  ;;  %v1794_v32 = vrot.slane %v1231_v26, %v1749_v6  ;;  %v1797_v33 = vrot.slane %v1231_v26, %v1751_v7  ;;  %v1800_v34 = vrot.slane %v1232_v27, %v1749_v6  ;;  %v1803_v35 = vrot.slane %v1232_v27, %v1751_v7  ;;  %v1236_v8 = vld [vmem:[%s2068_s1 + $0x10] ss:$8 sm:$0x3]  ;;  %s858_s13 = sld [smem:[#allocation5]] }
  0x64   : > { %612 = vrot.lane.b32.xlu1 %v1711_v0, %s2098_s26  ;;  %590 = vrot.lane.b32.xlu0 %v1711_v0, %s1492_s29  ;;  %v1818_v43 = vrot.slane %v1233_v36, %v1749_v6  ;;  %v1821_v44 = vrot.slane %v1233_v36, %v1751_v7  ;;  %v1234_v57 = vld [vmem:[%s2068_s1 + $0x6] ss:$8 sm:$0x3]  ;;  %v1235_v58 = vld [vmem:[%s2068_s1 + $0x7] ss:$8 sm:$0x3] }
  0x65   : > { %v1843_v63 = vrot.slane %v1234_v57, %v1749_v6  ;;  %v1846_v2 = vrot.slane %v1234_v57, %v1751_v7  ;;  %vm716_vm6 = vcmp.lt.s32.totalorder %v1747_v5, 112  ;;  %v1850_v3 = vrot.slane %v1235_v58, %v1749_v6  ;;  %s1241_s17 = sld [smem:[#allocation5 + $0x1]]  ;;  %s1242_s18 = sld [smem:[#allocation5 + $0x2]] }
  0x66   : > { %v1853_v4 = vrot.slane %v1235_v58, %v1751_v7  ;;  %vm736_vm7 = vcmp.lt.s32.totalorder %v1747_v5, 111  ;;  %s1255_s19 = sshll.u32 %s1607_s25, 8  ;;  %p2127_p11 = scmp.ne.s32.totalorder %s2108_s0, 0 }
  0x68   : > { %614 = vrot.lane.b32.xlu1 %v1717_v1, %s2098_s26  ;;  %592 = vrot.lane.b32.xlu0 %v1717_v1, %s1492_s29  ;;  %s1240_s26 = sld [smem:[#allocation2 + $0x2]] }
  0x6c   : > { %634 = vrot.lane.b32.xlu1 %v1717_v1, %s2092_s20  ;;  %632 = vrot.lane.b32.xlu0 %v1711_v0, %s2092_s20  ;;  %s1248_s20 = sld [smem:[#allocation8 + $0x2]] }
  0x70   : > { %654 = vrot.lane.b32.xlu1 %v1717_v1, %s1494_s30  ;;  %652 = vrot.lane.b32.xlu0 %v1711_v0, %s1494_s30 }
  0x74   : > { %674 = vrot.lane.b32.xlu1 %v1717_v1, %s1495_s28  ;;  %672 = vrot.lane.b32.xlu0 %v1711_v0, %s1495_s28 }
  0x78   : > { %694 = vrot.lane.b32.xlu1 %v1717_v1, %s2100_s27  ;;  %692 = vrot.lane.b32.xlu0 %v1711_v0, %s2100_s27  ;;  %s2123_s27 = smov 16  }
  0x7c   : > { %714 = vrot.lane.b32.xlu1 %v1717_v1, %s2096_s21  ;;  %712 = vrot.lane.b32.xlu0 %v1711_v0, %s2096_s21  ;;  %s846_s21 = sld [smem:[#allocation2]] }
  0x80   : > { %734 = vrot.lane.b32.xlu1 %v1717_v1, %s2094_s23  ;;  %732 = vrot.lane.b32.xlu0 %v1711_v0, %s2094_s23  ;;  %s1239_s23 = sld [smem:[#allocation2 + $0x1]] }
  0xd6   : > { %v613_v10 = vpop.permute.xlu1 %612  ;;  %v591_v11 = vpop.permute.xlu0 %590 }
  0xda   : > { %v615_v16 = vpop.permute.xlu1 %614  ;;  %v593_v17 = vpop.permute.xlu0 %592 }
  0xdb   : > { %v617_v18 = vsel %vm616_vm0, %v613_v10, %v615_v16  ;;  %v618_v19 = vsel %vm616_vm0, %v615_v16, %v613_v10  ;;  %v597_v20 = vsel %vm596_vm1, %v591_v11, %v593_v17  ;;  %v598_v21 = vsel %vm596_vm1, %v593_v17, %v591_v11 }
  0xdc   : > { %v630_v22 = vmul.f32 %v1762_v12, %v618_v19  ;;  %v610_v23 = vmul.f32 %v1765_v13, %v598_v21  ;;  %v611_v24 = vmul.f32 %v1768_v14, %v597_v20  ;;  %v631_v25 = vmul.f32 %v1771_v15, %v617_v18 }
  0xdd   : > { %v1868_v19 = vrot.slane %v1236_v8, %v1749_v6  ;;  %v1871_v20 = vrot.slane %v1236_v8, %v1751_v7 }
  0xde   : > { %v635_v28 = vpop.permute.xlu1 %634  ;;  %v633_v29 = vpop.permute.xlu0 %632  ;;  %v753_v30 = vpack.c.bf16 %v631_v25, %v611_v24  ;;  %v752_v31 = vpack.c.bf16 %v630_v22, %v610_v23 }
  0xdf   : > { %v637_v37 = vsel %vm636_vm2, %v633_v29, %v635_v28  ;;  %v638_v38 = vsel %vm636_vm2, %v635_v28, %v633_v29 }
  0xe0   : > { %774 = vmatprep.subr.bf16.mxu0 %v753_v30  ;;  %v650_v45 = vmul.f32 %v1794_v32, %v638_v38  ;;  %v651_v46 = vmul.f32 %v1797_v33, %v637_v37  ;;  %v762_v38 = vld [vmem:[%s2069_s2] sm:$0xf] }
  0xe1   : > { %775 = vmatpush1.bf16.msra.mxu0 %v752_v31 }
  0xe2   : > { %v655_v39 = vpop.permute.xlu1 %654  ;;  %v653_v40 = vpop.permute.xlu0 %652 }
  0xe3   : > { %v657_v41 = vsel %vm656_vm3, %v653_v40, %v655_v39  ;;  %v658_v42 = vsel %vm656_vm3, %v655_v39, %v653_v40 }
  0xe4   : > { %v670_v47 = vmul.f32 %v1800_v34, %v658_v42  ;;  %v671_v48 = vmul.f32 %v1803_v35, %v657_v41 }
  0xe6   : > { %v675_v49 = vpop.permute.xlu1 %674  ;;  %v673_v50 = vpop.permute.xlu0 %672  ;;  %v755_v51 = vpack.c.bf16 %v671_v48, %v651_v46  ;;  %v754_v52 = vpack.c.bf16 %v670_v47, %v650_v45 }
  0xe7   : > { %v677_v53 = vsel %vm676_vm4, %v673_v50, %v675_v49  ;;  %v678_v54 = vsel %vm676_vm4, %v675_v49, %v673_v50 }
  0xe8   : > { %v690_v55 = vmul.f32 %v1818_v43, %v677_v53  ;;  %v691_v56 = vmul.f32 %v1821_v44, %v678_v54  ;;  %776 = vmatprep.subr.bf16.mxu0 %v755_v51 }
  0xe9   : > { %777 = vmatpush1.bf16.msra.mxu0 %v754_v52 }
  0xea   : > { %v695_v59 = vpop.permute.xlu1 %694  ;;  %v693_v60 = vpop.permute.xlu0 %692  ;;  %v757_v61 = vpack.c.bf16 %v691_v56, %v1717_v1  ;;  %v756_v62 = vpack.c.bf16 %v690_v55, %v1711_v0 }
  0xeb   : > { %v697_v9 = vsel %vm696_vm5, %v693_v60, %v695_v59  ;;  %v698_v10 = vsel %vm696_vm5, %v695_v59, %v693_v60 }
  0xec   : > { %778 = vmatprep.subr.bf16.mxu0 %v757_v61  ;;  %v710_v21 = vmul.f32 %v1843_v63, %v697_v9  ;;  %v711_v22 = vmul.f32 %v1846_v2, %v698_v10 }
  0xed   : > { %779 = vmatpush1.bf16.msra.mxu0 %v756_v62 }
  0xee   : > { %v715_v11 = vpop.permute.xlu1 %714  ;;  %v713_v16 = vpop.permute.xlu0 %712 }
  0xef   : > { %v717_v17 = vsel %vm716_vm6, %v713_v16, %v715_v11  ;;  %v718_v18 = vsel %vm716_vm6, %v715_v11, %v713_v16 }
  0xf0   : > { %v730_v23 = vmul.f32 %v1850_v3, %v717_v17  ;;  %v731_v24 = vmul.f32 %v1853_v4, %v718_v18 }
  0xf2   : > { %v735_v25 = vpop.permute.xlu1 %734  ;;  %v733_v26 = vpop.permute.xlu0 %732  ;;  %v759_v27 = vpack.c.bf16 %v731_v24, %v711_v22  ;;  %v758_v28 = vpack.c.bf16 %v730_v23, %v710_v21  ;;  %v859_v24 = vstv %s858_s13  ;;  %s2126_s13 = smov 15  }
  0xf3   : > { %v737_v29 = vsel %vm736_vm7, %v733_v26, %v735_v25  ;;  %v738_v6 = vsel %vm736_vm7, %v735_v25, %v733_v26  ;;  %v862_v25 = vstv %s1241_s17  ;;  %v866_v26 = vld [vmem:[%s2074_s7] sm:$0xff]  ;;  %s1247_s17 = sld [smem:[#allocation8 + $0x1]] }
  0xf4   : > { %v750_v7 = vmul.f32 %v1868_v19, %v737_v29  ;;  %v751_v30 = vmul.f32 %v1871_v20, %v738_v6  ;;  %780 = vmatprep.subr.bf16.mxu0 %v759_v27  ;;  %v867_v27 = vstv %s1242_s18 }
  0xf5   : > { %781 = vmatpush1.bf16.msra.mxu0 %v758_v28  ;;  %v868_v29 = vmul.f32 %v867_v27, %v866_v26 }
  0xf6   : > { %v760_v31 = vpack.c.bf16 %v750_v7, %v750_v7  ;;  %v761_v36 = vpack.c.bf16 %v751_v30, %v751_v30 }
  0xf8   : > { %1237 = vmatprep.subr.msk.bf16.mxu0 %vm767_vm8, %v761_v36  ;;  %v769_v37 = vsel %vm767_vm8, %v760_v31, 0 }
  0xf9   : > { %783 = vmatpush1.bf16.msra.mxu0 %v769_v37  ;;  %v850_v37 = vstv %s1239_s23  ;;  %s2125_s23 = smov 111  }
  0xfc   : > { %1238 = vmatmul.mubr.msk.bf16.vlgmr.msra.gmra.mrb[0].mxu0 %vm763_vm9, %v762_v38  ;;  %v847_v38 = vstv %s846_s21  ;;  %s2124_s21 = smov 112  }
 0x1cf   : > { %v1889_v39 = vpop.f32.mrb[0].mxu0 }
 0x1d0   : > { %v1891_v40 = vpop.f32.mrb[1].mxu0  ;;  %v818_v41 = vmul.f32 %v1889_v39, %v1889_v39 }
 0x1d1   : > { %v812_v42 = vpop.f32.mrb[2].mxu0  ;;  %v815_v45 = vadd.f32 %v1891_v40, %v1889_v39  ;;  %v819_v46 = vmul.f32 %v1891_v40, %v1891_v40 }
 0x1d2   : > { %v813_v47 = vpop.f32.mrb[3].mxu0  ;;  %v854_v42 = vld [vmem:[%s2073_s6] sm:$0xff] }
 0x1d3   : > { %816 = vadd.xlane.f32.xlu0 %v815_v45  ;;  %v820_v48 = vadd.f32 %v819_v46, %v818_v41  ;;  %v855_v45 = vstv %s1240_s26  ;;  %s2122_s26 = smov 113  }
 0x1d5   : > { %821 = vadd.xlane.f32.xlu1 %v820_v48  ;;  %v856_v48 = vmul.f32 %v855_v45, %v854_v42 }
 0x260   : > { %v817_v49 = vpop.xlane.xlu0 %816 }
 0x261   : > { %v823_v50 = vmul.f32 0.00390625, %v817_v49  ;;  %v870_v49 = vld [vmem:[%s2071_s4] sm:$0xff] }
 0x262   : > { %v822_v51 = vpop.xlane.xlu1 %821 }
 0x263   : > { %v828_v52 = vrot.slane %v823_v50, 4  ;;  %v824_v53 = vmul.f32 0.00390625, %v822_v51  ;;  %v825_v54 = vmul.f32 %v823_v50, %v823_v50  ;;  %v848_v46 = vmul.f32 %v847_v38, %v823_v50 }
 0x265   : > { %v829_v55 = vadd.f32 %v828_v52, %v823_v50  ;;  %v826_v56 = vsub.f32 %v824_v53, %v825_v54 }
 0x267   : > { %v830_v57 = vrot.slane %v829_v55, 2  ;;  %v827_v58 = vmax.f32 %v826_v56, 0.0 }
 0x269   : > { %v831_v59 = vadd.f32 %v830_v57, %v829_v55  ;;  %v835_v60 = vadd.f32 %v827_v58, %v825_v54  ;;  %v860_v6 = vmul.f32 %v859_v24, %v827_v58  ;;  %v874_v54 = vld [vmem:[%s2072_s5] sm:$0xff] }
 0x26b   : > { %v832_v61 = vrot.slane %v831_v59, 1  ;;  %v836_v62 = vrot.slane %v835_v60, 4 }
 0x26d   : > { %v837_v8 = vadd.f32 %v836_v62, %v835_v60  ;;  %v833_v9 = vadd.f32 %v832_v61, %v831_v59 }
 0x26f   : > { %v838_v10 = vrot.slane %v837_v8, 2  ;;  %v834_v16 = vmul.f32 0.125, %v833_v9 }
 0x271   : > { %v839_v11 = vadd.f32 %v838_v10, %v837_v8  ;;  %v843_v22 = vmul.f32 %v834_v16, %v834_v16  ;;  %v851_v41 = vmul.f32 %v850_v37, %v834_v16 }
 0x273   : > { %v840_v17 = vrot.slane %v839_v11, 1  ;;  %v852_v47 = vadd.f32 %v851_v41, %v848_v46 }
 0x275   : > { %v841_v18 = vadd.f32 %v840_v17, %v839_v11  ;;  %v857_v53 = vadd.f32 %v856_v48, %v852_v47 }
 0x277   : > { %v842_v21 = vmul.f32 0.125, %v841_v18 }
 0x279   : > { %v844_v23 = vsub.f32 %v842_v21, %v843_v22 }
 0x27b   : > { %v845_v28 = vmax.f32 %v844_v23, 0.0 }
 0x27d   : > { %v863_v7 = vmul.f32 %v862_v25, %v845_v28 }
 0x27f   : > { %v864_v30 = vadd.f32 %v863_v7, %v860_v6 }
 0x281   : > { %v869_v31 = vadd.f32 %v868_v29, %v864_v30 }
 0x283   : > { %v871_v36 = vadd.f32 1e-05, %v869_v31 }
 0x285   : > { %1347 = vrsqrt.f32 %v871_v36 }
 0x28f   : > { %v1348_v51 = vpop.eup %1347 }
 0x290   : > { %v873_v52 = vmul.f32 %v1348_v51, %v870_v49 }
 0x292   : > { %879 = vperm.xlu0 %1345, %v873_v52   ;;  %v875_v55 = vmul.f32 %v873_v52, %v857_v53 }
 0x294   : > { %v876_v56 = vsub.f32 %v874_v54, %v875_v55 }
 0x296   : > { %886 = vperm.xlu1 %1346, %v876_v56  }
 0x311   : > { %v880_v57 = vpop.permute.xlu0 %879 }
 0x312   : > { %v882_v50 = vmul.f32 %v880_v57, %v1889_v39  ;;  %v883_v59 = vmul.f32 %v880_v57, %v1891_v40 }
 0x315   : > { %v887_v58 = vpop.permute.xlu1 %886 }
 0x316   : > { %v889_v60 = vadd.f32 %v887_v58, %v882_v50  ;;  %v890_v61 = vadd.f32 %v887_v58, %v883_v59 }
 0x318   : > { %v1913_v62 = vmax.f32 %v889_v60, 0.0  ;;  %v892_v8 = vmax.f32 %v890_v61, 0.0 }
 0x31a   : > { %917 = vrot.lane.b32.xlu0 %v1913_v62, %s1494_s30  ;;  %893 = vrot.lane.b32.xlu1 %v1913_v62, %s1492_s29 }
 0x31e   : > { %925 = vrot.lane.b32.xlu0 %v1913_v62, %s1495_s28  ;;  %895 = vrot.lane.b32.xlu1 %v892_v8, %s1492_s29 }
 0x322   : > { %933 = vrot.lane.b32.xlu0 %v1913_v62, %s2122_s26  ;;  %901 = vrot.lane.b32.xlu1 %v1913_v62, %s2123_s27 }
 0x326   : > { %941 = vrot.lane.b32.xlu0 %v1913_v62, %s2124_s21  ;;  %903 = vrot.lane.b32.xlu1 %v892_v8, %s2123_s27  ;;  %s1049_s27 = sld [smem:[#allocation7]] }
 0x32a   : > { %949 = vrot.lane.b32.xlu0 %v1913_v62, %s2125_s23  ;;  %909 = vrot.lane.b32.xlu1 %v1913_v62, %s2126_s13 }
 0x32e   : > { %911 = vrot.lane.b32.xlu1 %v892_v8, %s2126_s13  ;;  %s2025_s13 = scalar_lea.hbm %s2083_s16, %s1255_s19 }
 0x332   : > { %919 = vrot.lane.b32.xlu1 %v892_v8, %s1494_s30  ;;  %s1500_s30 = smov [#allocation10]  }
 0x336   : > { %927 = vrot.lane.b32.xlu1 %v892_v8, %s1495_s28  ;;  %s1061_s28 = sld [smem:[#allocation8]] }
 0x33a   : > { %935 = vrot.lane.b32.xlu1 %v892_v8, %s2122_s26  ;;  %s1245_s26 = sld [smem:[#allocation7 + $0x1]] }
 0x33e   : > { %943 = vrot.lane.b32.xlu1 %v892_v8, %s2124_s21  ;;  %s1246_s21 = sld [smem:[#allocation7 + $0x2]] }
 0x342   : > { %951 = vrot.lane.b32.xlu1 %v892_v8, %s2125_s23 }
 0x38c   : > { %v894_v39 = vpop.permute.xlu1 %893  ;;  %v918_v25 = vpop.permute.xlu0 %917 }
 0x390   : > { %v896_v40 = vpop.permute.xlu1 %895  ;;  %v926_v6 = vpop.permute.xlu0 %925 }
 0x391   : > { %v897_v10 = vsel %vm596_vm1, %v894_v39, %v896_v40  ;;  %v898_v11 = vsel %vm596_vm1, %v896_v40, %v894_v39  ;;  %v967_v39 = vld [vmem:[%s2070_s3] sm:$0xf] }
 0x392   : > { %v899_v21 = vmul.f32 %v898_v11, %v1765_v13  ;;  %v900_v23 = vmul.f32 %v897_v10, %v1768_v14 }
 0x394   : > { %v902_v9 = vpop.permute.xlu1 %901  ;;  %v934_v38 = vpop.permute.xlu0 %933 }
 0x398   : > { %v904_v16 = vpop.permute.xlu1 %903  ;;  %v942_v49 = vpop.permute.xlu0 %941 }
 0x399   : > { %v905_v17 = vsel %vm616_vm0, %v902_v9, %v904_v16  ;;  %v906_v18 = vsel %vm616_vm0, %v904_v16, %v902_v9 }
 0x39a   : > { %v907_v22 = vmul.f32 %v906_v18, %v1762_v12  ;;  %v908_v24 = vmul.f32 %v905_v17, %v1771_v15 }
 0x39c   : > { %v910_v26 = vpop.permute.xlu1 %909  ;;  %v958_v27 = vpack.c.bf16 %v908_v24, %v900_v23  ;;  %v957_v28 = vpack.c.bf16 %v907_v22, %v899_v21  ;;  %v950_v50 = vpop.permute.xlu0 %949 }
 0x39e   : > { %977 = vmatprep.subr.bf16.mxu1 %v958_v27 }
 0x39f   : > { %978 = vmatpush1.bf16.msra.mxu1 %v957_v28 }
 0x3a0   : > { %v912_v29 = vpop.permute.xlu1 %911 }
 0x3a1   : > { %v913_v7 = vsel %vm636_vm2, %v910_v26, %v912_v29  ;;  %v914_v13 = vsel %vm636_vm2, %v912_v29, %v910_v26 }
 0x3a2   : > { %v915_v15 = vmul.f32 %v914_v13, %v1794_v32  ;;  %v916_v31 = vmul.f32 %v913_v7, %v1797_v33 }
 0x3a4   : > { %v920_v30 = vpop.permute.xlu1 %919 }
 0x3a5   : > { %v921_v12 = vsel %vm656_vm3, %v918_v25, %v920_v30  ;;  %v922_v14 = vsel %vm656_vm3, %v920_v30, %v918_v25 }
 0x3a6   : > { %v923_v36 = vmul.f32 %v922_v14, %v1800_v34  ;;  %v924_v37 = vmul.f32 %v921_v12, %v1803_v35 }
 0x3a8   : > { %v928_v41 = vpop.permute.xlu1 %927  ;;  %v960_v42 = vpack.c.bf16 %v924_v37, %v916_v31  ;;  %v959_v45 = vpack.c.bf16 %v923_v36, %v915_v15 }
 0x3a9   : > { %v929_v46 = vsel %vm676_vm4, %v926_v6, %v928_v41  ;;  %v930_v47 = vsel %vm676_vm4, %v928_v41, %v926_v6 }
 0x3aa   : > { %v931_v48 = vmul.f32 %v929_v46, %v1818_v43  ;;  %v932_v32 = vmul.f32 %v930_v47, %v1821_v44  ;;  %979 = vmatprep.subr.bf16.mxu1 %v960_v42  ;;  %v1065_v46 = vstv %s1247_s17  ;;  %v1069_v47 = vld [vmem:[%s2078_s11] sm:$0xff] }
 0x3ab   : > { %980 = vmatpush1.bf16.msra.mxu1 %v959_v45  ;;  %v1062_v45 = vstv %s1061_s28  ;;  %s1415_s28 = sshll.u32 %s1500_s30, 4  ;;  %s1416_s28 = int_to_ptr.vmem [resolvable:$false] %s1415_s28 }
 0x3ac   : > { %v936_v33 = vpop.permute.xlu1 %935  ;;  %v962_v34 = vpack.c.bf16 %v932_v32, %v892_v8  ;;  %v961_v35 = vpack.c.bf16 %v931_v48, %v1913_v62  ;;  %v1070_v48 = vstv %s1248_s20  ;;  %s564_s20 = sand.u32 1, %s1477_s22   ;;  %s1417_s17 = scalar_lea.vmem %s1416_s28, 512 }
 0x3ad   : > { %v937_v51 = vsel %vm696_vm5, %v934_v38, %v936_v33  ;;  %v938_v52 = vsel %vm696_vm5, %v936_v33, %v934_v38  ;;  %v1071_v33 = vmul.f32 %v1070_v48, %v1069_v47  ;;  %s1227_s18 = sshll.u32 %s564_s20, 4  ;;  %s1101_s25 = scalar_lea.sflag [#allocation3], %s564_s20 }
 0x3ae   : > { %981 = vmatprep.subr.bf16.mxu1 %v962_v34  ;;  %v939_v54 = vmul.f32 %v937_v51, %v1843_v63  ;;  %v940_v55 = vmul.f32 %v938_v52, %v1846_v2 }
 0x3af   : > { %982 = vmatpush1.bf16.msra.mxu1 %v961_v35 }
 0x3b0   : > { %v944_v53 = vpop.permute.xlu1 %943 }
 0x3b1   : > { %v945_v43 = vsel %vm716_vm6, %v942_v49, %v944_v53  ;;  %v946_v44 = vsel %vm716_vm6, %v944_v53, %v942_v49  ;;  %v1053_v53 = vstv %s1245_s26  ;;  %s566_s26 = scalar_lea.vmem [#allocation10], %s1227_s18 }
 0x3b2   : > { %v947_v56 = vmul.f32 %v945_v43, %v1850_v3  ;;  %v948_v57 = vmul.f32 %v946_v44, %v1853_v4  ;;  %v1050_v43 = vstv %s1049_s27  ;;  %s1115_s27 = sshll.u32 %s566_s26, 4  ;;  %s2027_s27 = int_to_ptr.vmem [resolvable:$true] %s1115_s27 }
 0x3b3   : > { %s1411_s29 = scalar_lea.vmem %s2027_s27, 256  ;;  %p1418_p2 = scmp.lt.s32.totalorder %s2027_s27, %s1416_s28 }
 0x3b4   : > { %v952_v58 = vpop.permute.xlu1 %951  ;;  %v964_v59 = vpack.c.bf16 %v948_v57, %v940_v55  ;;  %v963_v60 = vpack.c.bf16 %v947_v56, %v939_v54  ;;  %v1057_v54 = vld [vmem:[%s2077_s10] sm:$0xff]  ;;  %v1058_v55 = vstv %s1246_s21  ;;  %p1412_p8 = scmp.ne.s32.totalorder %s2027_s27, %s1411_s29  ;;  %p1419_p3 = scmp.lt.s32.totalorder %s1417_s17, %s1411_s29 }
 0x3b5   : > { %v953_v61 = vsel %vm736_vm7, %v950_v50, %v952_v58  ;;  %v954_v62 = vsel %vm736_vm7, %v952_v58, %v950_v50  ;;  %v1059_v50 = vmul.f32 %v1058_v55, %v1057_v54  ;;  %v1073_v58 = vld [vmem:[%s2075_s8] sm:$0xff] }
 0x3b6   : > { %v955_v8 = vmul.f32 %v953_v61, %v1868_v19  ;;  %v956_v63 = vmul.f32 %v954_v62, %v1871_v20  ;;  %983 = vmatprep.subr.bf16.mxu1 %v964_v59  ;;  %v1077_v62 = vld [vmem:[%s2076_s9] sm:$0xff]  ;;  %p1413_p13 = pnand %p1412_p8, %p2127_p11  ;;  %p1420_p4 = por %p1419_p3, %p1418_p2 }
 0x3b7   : > { %984 = vmatpush1.bf16.msra.mxu1 %v963_v60 }
 0x3b8   : > { %v965_v2 = vpack.c.bf16 %v955_v8, %v955_v8  ;;  %v966_v3 = vpack.c.bf16 %v956_v63, %v956_v63  ;;  %p1414_p1 = pneg %p1413_p13 }
 0x3ba   : > { %1243 = vmatprep.subr.msk.bf16.mxu1 %vm767_vm8, %v966_v3  ;;  %v972_v4 = vsel %vm767_vm8, %v965_v2, 0  ;;  %p1421_p9 = pnand %p1420_p4, %p1414_p1 }
 0x3bb   : > { %986 = vmatpush1.bf16.msra.mxu1 %v972_v4 }
 0x3be   : > { %1244 = vmatmul.mubr.msk.bf16.vlgmr.msra.gmra.mrb[0].mxu1 %vm763_vm9, %v967_v39 }
 0x491   : > { %v1994_v5 = vpop.f32.mrb[0].mxu1 }
 0x492   : > { %v1996_v19 = vpop.f32.mrb[1].mxu1  ;;  %v1021_v20 = vmul.f32 %v1994_v5, %v1994_v5 }
 0x493   : > { %v1015_v40 = vpop.f32.mrb[2].mxu1  ;;  %v1018_v9 = vadd.f32 %v1996_v19, %v1994_v5  ;;  %v1022_v10 = vmul.f32 %v1996_v19, %v1996_v19 }
 0x494   : > { %v1016_v11 = vpop.f32.mrb[3].mxu1 }
 0x495   : > { %1019 = vadd.xlane.f32.xlu0 %v1018_v9  ;;  %v1023_v16 = vadd.f32 %v1022_v10, %v1021_v20 }
 0x497   : > { %1024 = vadd.xlane.f32.xlu1 %v1023_v16 }
 0x522   : > { %v1020_v17 = vpop.xlane.xlu0 %1019 }
 0x523   : > { %v1026_v18 = vmul.f32 0.00390625, %v1020_v17 }
 0x524   : > { %v1025_v21 = vpop.xlane.xlu1 %1024 }
 0x525   : > { %v1031_v22 = vrot.slane %v1026_v18, 4  ;;  %v1027_v23 = vmul.f32 0.00390625, %v1025_v21  ;;  %v1028_v24 = vmul.f32 %v1026_v18, %v1026_v18  ;;  %v1051_v56 = vmul.f32 %v1050_v43, %v1026_v18 }
 0x527   : > { %v1032_v25 = vadd.f32 %v1031_v22, %v1026_v18  ;;  %v1029_v26 = vsub.f32 %v1027_v23, %v1028_v24 }
 0x529   : > { %v1033_v27 = vrot.slane %v1032_v25, 2  ;;  %v1030_v28 = vmax.f32 %v1029_v26, 0.0 }
 0x52b   : > { %v1034_v29 = vadd.f32 %v1033_v27, %v1032_v25  ;;  %v1038_v6 = vadd.f32 %v1030_v28, %v1028_v24  ;;  %v1063_v34 = vmul.f32 %v1062_v45, %v1030_v28 }
 0x52d   : > { %v1035_v7 = vrot.slane %v1034_v29, 1  ;;  %v1039_v13 = vrot.slane %v1038_v6, 4 }
 0x52f   : > { %v1040_v30 = vadd.f32 %v1039_v13, %v1038_v6  ;;  %v1036_v12 = vadd.f32 %v1035_v7, %v1034_v29 }
 0x531   : > { %v1041_v14 = vrot.slane %v1040_v30, 2  ;;  %v1037_v31 = vmul.f32 0.125, %v1036_v12 }
 0x533   : > { %v1042_v15 = vadd.f32 %v1041_v14, %v1040_v30  ;;  %v1046_v41 = vmul.f32 %v1037_v31, %v1037_v31  ;;  %v1054_v44 = vmul.f32 %v1053_v53, %v1037_v31 }
 0x535   : > { %v1043_v36 = vrot.slane %v1042_v15, 1  ;;  %v1055_v57 = vadd.f32 %v1054_v44, %v1051_v56 }
 0x537   : > { %v1044_v37 = vadd.f32 %v1043_v36, %v1042_v15  ;;  %v1060_v61 = vadd.f32 %v1059_v50, %v1055_v57 }
 0x539   : > { %v1045_v38 = vmul.f32 0.125, %v1044_v37 }
 0x53b   : > { %v1047_v42 = vsub.f32 %v1045_v38, %v1046_v41 }
 0x53d   : > { %v1048_v32 = vmax.f32 %v1047_v42, 0.0 }
 0x53f   : > { %v1066_v35 = vmul.f32 %v1065_v46, %v1048_v32 }
 0x541   : > { %v1067_v49 = vadd.f32 %v1066_v35, %v1063_v34 }
 0x543   : > { %v1072_v51 = vadd.f32 %v1071_v33, %v1067_v49 }
 0x545   : > { %v1074_v52 = vadd.f32 1e-05, %v1072_v51 }
 0x547   : > { %1349 = vrsqrt.f32 %v1074_v52 }
 0x551   : > { %v1350_v59 = vpop.eup %1349 }
 0x552   : > { %v1076_v60 = vmul.f32 %v1350_v59, %v1073_v58 }
 0x554   : > { %1082 = vperm.xlu0 %1345, %v1076_v60   ;;  %v1078_v8 = vmul.f32 %v1076_v60, %v1060_v61 }
 0x556   : > { %v1079_v63 = vsub.f32 %v1077_v62, %v1078_v8 }
 0x558   : > { %1089 = vperm.xlu1 %1346, %v1079_v63  }
 0x5d3   : > { %v1083_v2 = vpop.permute.xlu0 %1082 }
 0x5d4   : > { %v1085_v3 = vmul.f32 %v1083_v2, %v1994_v5  ;;  %v1086_v4 = vmul.f32 %v1083_v2, %v1996_v19 }
 0x5d7   : > { %v1090_v39 = vpop.permute.xlu1 %1089 }
 0x5d8   : > { %v1092_v20 = vadd.f32 %v1090_v39, %v1085_v3  ;;  %v1093_v40 = vadd.f32 %v1090_v39, %v1086_v4 }
 0x5da   : > { %v1094_v9 = vadd.f32 %v1092_v20, %v1711_v0  ;;  %v1095_v10 = vadd.f32 %v1093_v40, %v1717_v1 }
 0x5dc   : > { %v1096_v11 = vmax.f32 %v1094_v9, 0.0  ;;  %v1097_v16 = vmax.f32 %v1095_v10, 0.0 }
 0x5de   : > { %1098 = vst [vmem:[%s566_s26] sm:$0xff] %v1096_v11  ;;  %1099 = vst [vmem:[%s566_s26 + $0x8] sm:$0xff] %v1097_v16 }
 0x5df   : > { %1424 = shalt.err (!%p1421_p9)
}
 0x5e0   : > { %s1425_s20 = scalar_lea.hbm %s2025_s13, 256  ;;  %s1429_s26 = scalar_lea.hbm %s2083_s16, 512 }
 0x5e1   : > { %p1426_p7 = scmp.ne.s32.totalorder %s2025_s13, %s1425_s20  ;;  %p1430_p6 = scmp.lt.u32.totalorder %s2025_s13, %s2083_s16 }
 0x5e2   : > { %p1431_p12 = scmp.lt.u32.totalorder %s1429_s26, %s1425_s20  ;;  %p1433_p8 = scmp.lt.u32.totalorder %s1425_s20, %s2025_s13 }
 0x5e3   : > { %p1427_p0 = pnand %p1426_p7, %p2127_p11 }
 0x5e4   : > { %p1432_p10 = por %p1431_p12, %p1430_p6 }
 0x5e5   : > { %p1428_p5 = pneg %p1427_p0 }
 0x5e6   : > { %p1434_p13 = por %p1433_p8, %p1432_p10 }
 0x5e8   : > { %p1435_p1 = pnand %p1434_p13, %p1428_p5 }
 0x5ea   : > { %1438 = shalt.err (!%p1435_p1)
}
 0x5eb   : > { %1272 = dma.vmem_to_hbm [thread:$0]  (%p2127_p11), %s2027_s27, 256, %s2025_s13, %s1101_s25  }
 0x5ec PF: > { %s2128_s29 = sld [smem:[#allocation15_spill]]  ;;  %s2129_s30 = sld [smem:[#allocation19_spill]] }
 0x5ed   : > { %p1299_p2 = scmp.ge.s32.totalorder %s1485_s24, 2 }
 0x5f2   : > { %s1127_s28 = sand.u32 1, %s2128_s29   ;;  %p2130_p3 = scmp.ne.s32.totalorder %s2129_s30, 0 }
 0x5f3   : > { %s1128_s17 = scalar_lea.sflag [#allocation3], %s1127_s28 }
 0x5f4   : > { %p1288_p4 = pnand %p1299_p2, %p2130_p3 }
 0x5f6   : > { %1468 = dma.done.wait (!%p1288_p4), %s1128_s17, 256  }
 0x5f7   : > { %1470 = vsyncadd (!%p1288_p4), %s1128_s17, 4294967040  ;;  %s2131_s24 = sld [smem:[#allocation17_spill]]  ;;  %s2132_s20 = sld [smem:[#allocation16_spill]] }
 0x5f8   : > { %s2133_s23 = sld [smem:[#allocation18_spill]]  ;;  %s2134_s21 = smov %s1477_s22 }
 0x5fd   : > { %p29_p9 = scmp.ge.s32.totalorder %s2131_s24, 4   ;;  %s2135_s22 = smov %s2132_s20 }
 0x5ff   :  { %31 = sbr.rel (!%p29_p9) target bundleno = 9 (0x9), region = 143 }
 0x606   :  { %1133 = vsyncpa [#allocation3], 1 }
 0x607   :  { %1135 = vsyncpa [#allocation3 + $0x1], 1 }
 0x608   :  { %1136 = vsyncpa [#allocation4], 1 }
 0x609   :  { %1138 = vsyncpa [#allocation4 + $0x1], 1 }
 0x60a   :  { %1139 = vsyncpa [#allocation6], 1 }
 0x60b   :  { %1140 = vsyncpa [#allocation9], 1 }

</bundles_post_ra>
